<compile_context>
chip_gen: v5e
topology: v5e:2x2
jax: 0.10.0
libtpu: 0.0.40
codegen_flags: <defaults>
</compile_context>

<pallas_src>
import jax
import jax.numpy as jnp
from jax.experimental import pallas as pl
from jax.experimental.pallas import tpu as pltpu


def _mlp_kernel(x_ref, w1_ref, b1_ref, w2_ref, b2_ref, o_ref):
    # x_ref: (TB, D), w1_ref: (D, H), b1_ref: (1, H), w2_ref: (H, O), b2_ref: (1, O)
    # o_ref: (TB, O)
    h = (jnp.dot(x_ref[...], w1_ref[...], preferred_element_type=jnp.float32)
         + b1_ref[...])
    h = jnp.maximum(h, 0.0)                                   # ReLU
    y = (jnp.dot(h, w2_ref[...], preferred_element_type=jnp.float32)
         + b2_ref[...])
    o_ref[...] = y.astype(o_ref.dtype)


def _round_up(x, m):
    return ((x + m - 1) // m) * m


def _vmem_f32_bytes(rows, cols):
    # f32 VMEM footprint of a (rows, cols) block after (8, 128) tiling/lane padding.
    return 4 * _round_up(max(rows, 1), 8) * _round_up(max(cols, 1), 128)


def model_forward(state, goal, w1, b1, w2, b2, *, block_b=1024,
                  vmem_budget_bytes=16 << 20):
    """Pallas forward. state: (B, S), goal: (B, G); returns (B, num_outputs)."""
    B, S = state.shape
    G = goal.shape[1]
    D = S + G
    H = w1.shape[1]
    O = w2.shape[1]
    assert w1.shape[0] == D

    # Concat once in the wrapper: 4*D bytes/row, fused by XLA. The kernel then runs a
    # single K=D dot instead of two K=S / K=G MXU passes (each would pad K to the full
    # MXU width anyway).
    x = jnp.concatenate([state, goal], axis=1)

    flops = 2 * B * (D * H + H * O)
    bytes_accessed = 4 * (B * D + D * H + H + H * O + O + B * O)
    cost = pl.CostEstimate(flops=flops, transcendentals=0,
                           bytes_accessed=bytes_accessed)

    # VMEM footprint of the no-grid path, including 128-lane padding (each per-row
    # array occupies a full 128-lane vreg row regardless of D/H/O) plus a hidden temp.
    weight_bytes = (_vmem_f32_bytes(D, H) + _vmem_f32_bytes(1, H)
                    + _vmem_f32_bytes(H, O) + _vmem_f32_bytes(1, O))
    per_row_bytes = (_vmem_f32_bytes(8, D) + _vmem_f32_bytes(8, H)
                     + _vmem_f32_bytes(8, O)) // 8
    whole_array_bytes = weight_bytes + _round_up(B, 8) * per_row_bytes

    if whole_array_bytes <= vmem_budget_bytes:
        # Small/medium batch: single whole-array VMEM kernel — no grid, no pipelining
        # machinery; one kernel invocation covers the whole batch.
        return pl.pallas_call(
            _mlp_kernel,
            out_shape=jax.ShapeDtypeStruct((B, O), jnp.float32),
            cost_estimate=cost,
        )(x, w1, b1, w2, b2)

    # Very large batch: tile only the batch axis. Weights stay VMEM-resident across all
    # grid steps (constant index_map). No jnp.pad / out[:B]: Pallas pads boundary-block
    # reads and masks boundary-block writes, and there is no cross-row reduction, so the
    # ragged tail is safe.
    nb = pl.cdiv(B, block_b)
    if nb > 1 and nb % 2 == 1:
        nb += 1  # even step count so both v7x TensorCores get balanced work
    tb = _round_up(pl.cdiv(B, nb), 8)  # sublane-aligned batch tile
    nb = pl.cdiv(B, tb)

    return pl.pallas_call(
        _mlp_kernel,
        out_shape=jax.ShapeDtypeStruct((B, O), jnp.float32),
        grid=(nb,),
        in_specs=[
            pl.BlockSpec((tb, D), lambda i: (i, 0)),
            pl.BlockSpec((D, H), lambda i: (0, 0)),
            pl.BlockSpec((1, H), lambda i: (0, 0)),
            pl.BlockSpec((H, O), lambda i: (0, 0)),
            pl.BlockSpec((1, O), lambda i: (0, 0)),
        ],
        out_specs=pl.BlockSpec((tb, O), lambda i: (i, 0)),
        compiler_params=pltpu.CompilerParams(
            dimension_semantics=("parallel",),
        ),
        cost_estimate=cost,
    )(x, w1, b1, w2, b2)


def init_params(key, num_inputs, num_outputs, hidden_size):
    """Deterministic init mimicking PyTorch nn.Linear default (uniform +-1/sqrt(fan_in))."""
    k1, k2, k3, k4 = jax.random.split(key, 4)
    bound1 = 1.0 / jnp.sqrt(num_inputs)
    bound2 = 1.0 / jnp.sqrt(hidden_size)
    w1 = jax.random.uniform(k1, (num_inputs, hidden_size), jnp.float32, -bound1, bound1)
    b1 = jax.random.uniform(k2, (1, hidden_size), jnp.float32, -bound1, bound1)
    w2 = jax.random.uniform(k3, (hidden_size, num_outputs), jnp.float32, -bound2, bound2)
    b2 = jax.random.uniform(k4, (1, num_outputs), jnp.float32, -bound2, bound2)
    return w1, b1, w2, b2


def _reference(state, goal, w1, b1, w2, b2):
    x = jnp.concatenate([state, goal], axis=1)
    return jnp.maximum(x @ w1 + b1, 0.0) @ w2 + b2


if __name__ == "__main__":
    # Small shapes consistent with the module: state_dim + goal_dim = num_inputs
    state_dim = 8
    goal_dim = 8
    num_inputs = state_dim + goal_dim
    num_outputs = 4
    hidden_size = 32

    key = jax.random.PRNGKey(0)
    k_s, k_g, k_p, k_s2, k_g2 = jax.random.split(key, 5)
    w1, b1, w2, b2 = init_params(k_p, num_inputs, num_outputs, hidden_size)

    # --- small batch: whole-array no-grid path (everything VMEM-resident) ---
    batch = 8
    state = jax.random.normal(k_s, (batch, state_dim), jnp.float32)
    goal = jax.random.normal(k_g, (batch, goal_dim), jnp.float32)

    out = model_forward(state, goal, w1, b1, w2, b2)
    jax.block_until_ready(out)
    ref = _reference(state, goal, w1, b1, w2, b2)
    assert out.shape == (batch, num_outputs)
    assert jnp.allclose(out, ref, atol=1e-5, rtol=1e-5)

    # --- larger ragged batch: force the gridded path (tiny VMEM budget) to exercise
    #     batch tiling, resident weights, even step count, and boundary-block masking ---
    big_batch = 1150
    state2 = jax.random.normal(k_s2, (big_batch, state_dim), jnp.float32)
    goal2 = jax.random.normal(k_g2, (big_batch, goal_dim), jnp.float32)

    out2 = model_forward(state2, goal2, w1, b1, w2, b2,
                         block_b=512, vmem_budget_bytes=0)
    jax.block_until_ready(out2)
    ref2 = _reference(state2, goal2, w1, b1, w2, b2)
    assert out2.shape == (big_batch, num_outputs)
    assert jnp.allclose(out2, ref2, atol=1e-5, rtol=1e-5)

    print("KERNEL_OK")
</pallas_src>

<mosaic_0001>
module attributes {stable_mosaic.version = 11 : i64} {
  func.func @_mlp_kernel(%arg0: memref<8x16xf32, #tpu.memory_space<vmem>>, %arg1: memref<16x32xf32, #tpu.memory_space<vmem>>, %arg2: memref<1x32xf32, #tpu.memory_space<vmem>>, %arg3: memref<32x4xf32, #tpu.memory_space<vmem>>, %arg4: memref<1x4xf32, #tpu.memory_space<vmem>>, %arg5: memref<8x4xf32, #tpu.memory_space<vmem>>) attributes {dimension_semantics = [], scalar_prefetch = 0 : i64, scratch_operands = 0 : i64, tpu.core_type = #tpu.core_type<tc>} {
    %c0 = arith.constant 0 : index
    %c0_0 = arith.constant 0 : index
    %0 = vector.load %arg0[%c0, %c0_0] : memref<8x16xf32, #tpu.memory_space<vmem>>, vector<8x16xf32>
    %c0_1 = arith.constant 0 : index
    %c0_2 = arith.constant 0 : index
    %1 = vector.load %arg1[%c0_1, %c0_2] : memref<16x32xf32, #tpu.memory_space<vmem>>, vector<16x32xf32>
    %cst = arith.constant dense<0.000000e+00> : vector<8x32xf32>
    %2 = tpu.matmul %0, %1, %cst {dimension_numbers = #tpu.dot_dimension_numbers<[1], [0], [0], [1], [0, 0, 1, 1], [], []>} : vector<8x16xf32>, vector<16x32xf32>, vector<8x32xf32> -> vector<8x32xf32>
    %c0_3 = arith.constant 0 : index
    %c0_4 = arith.constant 0 : index
    %3 = vector.load %arg2[%c0_3, %c0_4] : memref<1x32xf32, #tpu.memory_space<vmem>>, vector<1x32xf32>
    %4 = vector.broadcast %3 : vector<1x32xf32> to vector<8x32xf32>
    %5 = arith.addf %2, %4 : vector<8x32xf32>
    %cst_5 = arith.constant 0.000000e+00 : f32
    %6 = vector.broadcast %cst_5 : f32 to vector<8x32xf32>
    %7 = arith.maximumf %5, %6 : vector<8x32xf32>
    %c0_6 = arith.constant 0 : index
    %c0_7 = arith.constant 0 : index
    %8 = vector.load %arg3[%c0_6, %c0_7] : memref<32x4xf32, #tpu.memory_space<vmem>>, vector<32x4xf32>
    %cst_8 = arith.constant dense<0.000000e+00> : vector<8x4xf32>
    %9 = tpu.matmul %7, %8, %cst_8 {dimension_numbers = #tpu.dot_dimension_numbers<[1], [0], [0], [1], [0, 0, 1, 1], [], []>} : vector<8x32xf32>, vector<32x4xf32>, vector<8x4xf32> -> vector<8x4xf32>
    %c0_9 = arith.constant 0 : index
    %c0_10 = arith.constant 0 : index
    %10 = vector.load %arg4[%c0_9, %c0_10] : memref<1x4xf32, #tpu.memory_space<vmem>>, vector<1x4xf32>
    %11 = vector.broadcast %10 : vector<1x4xf32> to vector<8x4xf32>
    %12 = arith.addf %9, %11 : vector<8x4xf32>
    %c0_11 = arith.constant 0 : index
    %c0_12 = arith.constant 0 : index
    %13 = vector.load %arg5[%c0_11, %c0_12] : memref<8x4xf32, #tpu.memory_space<vmem>>, vector<8x4xf32>
    tpu.vector_store %arg5[%c0_11, %c0_12], %12 {strides = array<i32>} : memref<8x4xf32, #tpu.memory_space<vmem>>, vector<8x4xf32>,
    return
  }
}

</mosaic_0001>

<bundles_post_ra>
// kernel: tpu_custom_call.1
= control target key start
LH: loop header
LB: loop body
LE: loop exit
PB: predicated region body
PF: predicated region fallthrough
CT: control target
= control target key end

     0   :  { %vm27_vm0 = vcmask 130048   ;;  %vm60_vm1 = vcmask 261120   ;;  %vm84_vm2 = vcmask 31744   ;;  %s154_s1 = inlined_call_operand.vmem [shape: f32[16,32], index: 1, kind: input, shape index: {}]   ;;  %s155_s0 = inlined_call_operand.vmem [shape: f32[8,16], index: 0, kind: input, shape index: {}]   ;;  %s156_s3 = inlined_call_operand.vmem [shape: f32[32,4], index: 3, kind: input, shape index: {}]   ;;  %s157_s2 = inlined_call_operand.vmem [shape: f32[1,32], index: 2, kind: input, shape index: {}]   ;;  %s158_s4 = inlined_call_operand.vmem [shape: f32[1,4], index: 4, kind: input, shape index: {}]   ;;  %s159_s5 = inlined_call_operand.vmem [shape: f32[8,4], index: 5, kind: output, shape index: {}]  }
   0x1   :  { %v22_v0 = vld [vmem:[%s154_s1 + $0x8] sm:$0xff]  ;;  %v21_v1 = vld [vmem:[%s154_s1] sm:$0xff]  ;;  %v55_v3 = vld [vmem:[%s156_s3 + $0x18] sm:$0xff] }
   0x2   :  { %45 = vmatpush.msra.mxu0 %v22_v0  ;;  %v20_v2 = vld [vmem:[%s155_s0] sm:$0xff]  ;;  %76 = vmatpush.msra.mxu1 %v55_v3  ;;  %v54_v4 = vld [vmem:[%s156_s3 + $0x10] sm:$0xff]  ;;  %v53_v5 = vld [vmem:[%s156_s3 + $0x8] sm:$0xff] }
   0x3   :  { %v52_v6 = vld [vmem:[%s156_s3] sm:$0xff] }
   0x4   :  { %46 = vmatpush.msra.mxu0 %v21_v1  ;;  %77 = vmatpush.msra.mxu1 %v54_v4  ;;  %v92_v7 = vld [vmem:[%s157_s2] ss:$0 sm:$0xff] }
   0x5   :  { %90 = vmatmul.msk.f32.vlgmr.msra.gmra.mxu0 %vm27_vm0, %v20_v2  ;;  %v93_v11 = vld [vmem:[%s158_s4] ss:$0 sm:$0xff] }
   0x6   :  { %78 = vmatpush.msra.mxu1 %v53_v5 }
   0x8   :  { %79 = vmatpush.msra.mxu1 %v52_v6 }
  0x82   :  { %v48_v8 = vpop.f32.mrf.mxu0 }
  0x83   :  { %v49_v9 = vadd.f32 %v92_v7, %v48_v8 }
  0x85   :  { %v51_v10 = vmax.f32 %v49_v9, 0.0 }
  0x87   :  { %91 = vmatmul.msk.f32.vlgmr.msra.gmra.mxu1 %vm60_vm1, %v51_v10 }
 0x104   :  { %v81_v12 = vpop.f32.mrf.mxu1 }
 0x105   :  { %v82_v13 = vadd.f32 %v93_v11, %v81_v12 }
 0x107   :  { %85 = vst.msk [vmem:[%s159_s5] sm:$0xff] %vm84_vm2, %v82_v13 }

</bundles_post_ra>
